<compile_context>
chip_gen: v7x
topology: tpu7x:2x2x1
jax: 0.10.0
libtpu: 0.0.40
codegen_flags: <defaults>
</compile_context>

<pallas_src>
import functools

import jax
import jax.numpy as jnp
import numpy as np
from jax import lax
from jax.experimental import pallas as pl
from jax.experimental.pallas import tpu as pltpu


# --------------------------------------------------------------------------- #
# Pallas kernels (channels-last: C in the lane dim)
# --------------------------------------------------------------------------- #

def _dw_conv_cl_kernel(x_ref, w_ref, scale_ref, bias_ref, out_ref, pad_ref, *,
                       K, H, W, pad_lo):
    # x_ref:   (1, H, W, C) channels-last slab for one batch element
    # w_ref:   (K*K, C)     per-tap per-channel weights (lane vectors)
    # scale_ref / bias_ref: (1, C)
    # out_ref: (1, H, W, C)
    # pad_ref: VMEM scratch (H+K-1, W+K-1, C) f32 -> zero halo ('same' padding)
    pad_ref[...] = jnp.zeros_like(pad_ref)
    pad_ref[pad_lo:pad_lo + H, pad_lo:pad_lo + W, :] = x_ref[0].astype(jnp.float32)

    C = out_ref.shape[3]
    acc = jnp.zeros((H, W, C), jnp.float32)
    for di in range(K):                                      # unrolled K*K MAC
        for dj in range(K):
            t = di * K + dj
            w_tap = w_ref[t:t + 1, :].astype(jnp.float32)    # (1, C) lane vector
            acc = acc + w_tap * pad_ref[di:di + H, dj:dj + W, :]
    scale = scale_ref[...].astype(jnp.float32)               # (1, C)
    bias = bias_ref[...].astype(jnp.float32)                 # (1, C)
    out_ref[0] = (scale * (acc + bias)).astype(out_ref.dtype)


def depthwise_conv_cl(x_nhwc, w, scale, bias, kernel_size):
    """Depthwise KxK conv (padding='same', groups=C): scale * (conv(x) + bias).

    x_nhwc: (B, H, W, C) channels-last; w: (C, K, K); scale/bias: (C,).
    """
    B, H, W, C = x_nhwc.shape
    K = kernel_size
    pad_lo = (K - 1) // 2
    Hp, Wp = H + K - 1, W + K - 1
    w_tap = jnp.transpose(w, (1, 2, 0)).reshape(K * K, C)    # (K*K, C)
    kernel = functools.partial(_dw_conv_cl_kernel, K=K, H=H, W=W, pad_lo=pad_lo)
    # TODO(synk): tile H (with K-1 halo rows in the index_map) so per-step blocks
    # stay <= ~8-16 MiB for large H*W*C on v7x's 64 MiB VMEM.
    return pl.pallas_call(
        kernel,
        out_shape=jax.ShapeDtypeStruct((B, H, W, C), x_nhwc.dtype),
        grid_spec=pltpu.PrefetchScalarGridSpec(
            num_scalar_prefetch=0,
            grid=(B,),
            in_specs=[
                pl.BlockSpec((1, H, W, C), lambda b: (b, 0, 0, 0)),
                pl.BlockSpec((K * K, C), lambda b: (0, 0)),
                pl.BlockSpec((1, C), lambda b: (0, 0)),
                pl.BlockSpec((1, C), lambda b: (0, 0)),
            ],
            out_specs=pl.BlockSpec((1, H, W, C), lambda b: (b, 0, 0, 0)),
            scratch_shapes=[pltpu.VMEM((Hp, Wp, C), jnp.float32)],
        ),
        compiler_params=pltpu.CompilerParams(dimension_semantics=("parallel",)),
    )(x_nhwc, w_tap, scale.reshape(1, C), bias.reshape(1, C))


def _fused_base_add_pw_kernel(x_ref, tag_ref, w_ref, scale_ref, bias_ref, pw_ref,
                              out_ref, pad_ref, *, K, H, W, pad_lo):
    # Fused: base depthwise 'same' conv + bias/scale + x_tag add + 1x1 pointwise.
    # x_ref/tag_ref: (1, H, W, C)   w_ref: (K*K, C)   pw_ref: (C, Cout)
    # out_ref: (1, H, W, Cout)      pad_ref: VMEM (H+K-1, W+K-1, C) f32
    pad_ref[...] = jnp.zeros_like(pad_ref)
    pad_ref[pad_lo:pad_lo + H, pad_lo:pad_lo + W, :] = x_ref[0].astype(jnp.float32)

    C = x_ref.shape[3]
    Cout = out_ref.shape[3]
    acc = jnp.zeros((H, W, C), jnp.float32)
    for di in range(K):
        for dj in range(K):
            t = di * K + dj
            w_tap = w_ref[t:t + 1, :].astype(jnp.float32)
            acc = acc + w_tap * pad_ref[di:di + H, dj:dj + W, :]
    scale = scale_ref[...].astype(jnp.float32)
    bias = bias_ref[...].astype(jnp.float32)
    y = scale * (acc + bias) + tag_ref[0].astype(jnp.float32)        # (H, W, C)
    out = jnp.dot(y.reshape(H * W, C), pw_ref[...].astype(jnp.float32),
                  preferred_element_type=jnp.float32)                # (H*W, Cout)
    out_ref[0] = out.reshape(H, W, Cout).astype(out_ref.dtype)


def fused_base_add_pointwise(x_nhwc, tag_nhwc, base_w, base_scale, base_bias,
                             point_w, kernel_size):
    B, H, W, C = x_nhwc.shape
    Cout = point_w.shape[0]
    K = kernel_size
    pad_lo = (K - 1) // 2
    Hp, Wp = H + K - 1, W + K - 1
    w_tap = jnp.transpose(base_w, (1, 2, 0)).reshape(K * K, C)
    pw = jnp.transpose(point_w, (1, 0))                               # (Cin, Cout)
    kernel = functools.partial(_fused_base_add_pw_kernel,
                               K=K, H=H, W=W, pad_lo=pad_lo)
    return pl.pallas_call(
        kernel,
        out_shape=jax.ShapeDtypeStruct((B, H, W, Cout), x_nhwc.dtype),
        grid_spec=pltpu.PrefetchScalarGridSpec(
            num_scalar_prefetch=0,
            grid=(B,),
            in_specs=[
                pl.BlockSpec((1, H, W, C), lambda b: (b, 0, 0, 0)),
                pl.BlockSpec((1, H, W, C), lambda b: (b, 0, 0, 0)),
                pl.BlockSpec((K * K, C), lambda b: (0, 0)),
                pl.BlockSpec((1, C), lambda b: (0, 0)),
                pl.BlockSpec((1, C), lambda b: (0, 0)),
                pl.BlockSpec((C, Cout), lambda b: (0, 0)),
            ],
            out_specs=pl.BlockSpec((1, H, W, Cout), lambda b: (b, 0, 0, 0)),
            scratch_shapes=[pltpu.VMEM((Hp, Wp, C), jnp.float32)],
        ),
        compiler_params=pltpu.CompilerParams(dimension_semantics=("parallel",)),
    )(x_nhwc, tag_nhwc, w_tap, base_scale.reshape(1, C),
      base_bias.reshape(1, C), pw)


def _pointwise_kernel(x_ref, w_ref, o_ref):
    o_ref[...] = jnp.dot(x_ref[...].astype(jnp.float32),
                         w_ref[...].astype(jnp.float32),
                         preferred_element_type=jnp.float32).astype(o_ref.dtype)


def pointwise_conv_nhwc(y_nhwc, point_w, tile_m=512):
    """1x1 conv on channels-last input (only used for the stride>1 path)."""
    B, H, W, C = y_nhwc.shape
    Cout = point_w.shape[0]
    M = B * H * W
    xm = y_nhwc.reshape(M, C)                    # channels already in lane dim
    wm = jnp.transpose(point_w, (1, 0))          # (Cin, Cout)
    tm = M
    for cand in (tile_m, 256, 128, 64, 32, 16, 8):
        if cand <= M and M % cand == 0:
            tm = cand
            break
    out = pl.pallas_call(
        _pointwise_kernel,
        out_shape=jax.ShapeDtypeStruct((M, Cout), y_nhwc.dtype),
        grid_spec=pltpu.PrefetchScalarGridSpec(
            num_scalar_prefetch=0,
            grid=(M // tm,),
            in_specs=[pl.BlockSpec((tm, C), lambda i: (i, 0)),
                      pl.BlockSpec((C, Cout), lambda i: (0, 0))],
            out_specs=pl.BlockSpec((tm, Cout), lambda i: (i, 0)),
        ),
        compiler_params=pltpu.CompilerParams(dimension_semantics=("parallel",)),
    )(xm, wm)
    return out.reshape(B, H, W, Cout)


# -------------------- Haar (db1) wavelet transform glue -------------------- #
# Equivalent to F.conv2d / F.conv_transpose2d with the pywt 'db1' filter bank
# (stride 2, groups=C), expressed channels-last as a 2x2 block reshuffle.
# TODO(synk): fold the Haar WT/IWT shuffle into the depthwise Pallas kernels
# (in-kernel even/odd selects) to remove the remaining XLA relayout passes.

def haar_wt_nhwc(x):
    # x: (B, H, W, C) with H, W even -> (B, H/2, W/2, 4C); channel order
    # [c0_ll, c0_lh, c0_hl, c0_hh, c1_ll, ...] matching the grouped wavelet conv.
    B, H, W, C = x.shape
    r = x.reshape(B, H // 2, 2, W // 2, 2, C)
    a = r[:, :, 0, :, 0, :]
    b = r[:, :, 0, :, 1, :]
    c = r[:, :, 1, :, 0, :]
    d = r[:, :, 1, :, 1, :]
    ll = 0.5 * (a + b + c + d)
    lh = 0.5 * (a + b - c - d)
    hl = 0.5 * (a - b + c - d)
    hh = 0.5 * (a - b - c + d)
    return jnp.stack([ll, lh, hl, hh], axis=-1).reshape(B, H // 2, W // 2, 4 * C)


def haar_iwt_nhwc(xt, C):
    B, h, w, _ = xt.shape
    t = xt.reshape(B, h, w, C, 4)
    ll, lh, hl, hh = t[..., 0], t[..., 1], t[..., 2], t[..., 3]
    a = 0.5 * (ll + lh + hl + hh)
    b = 0.5 * (ll + lh - hl - hh)
    c = 0.5 * (ll - lh + hl - hh)
    d = 0.5 * (ll - lh - hl + hh)
    top = jnp.stack([a, b], axis=3)              # (B, h, w, 2, C)
    bot = jnp.stack([c, d], axis=3)              # (B, h, w, 2, C)
    out = jnp.stack([top, bot], axis=2)          # (B, h, 2, w, 2, C)
    return out.reshape(B, 2 * h, 2 * w, C)


# ------------------------------ module forward ----------------------------- #

def depthwise_separable_conv_forward(x, params, kernel_size, stride):
    """x: (B, C, H, W) NCHW (PyTorch layout). Returns NCHW output."""
    B, C, H, W = x.shape
    # Single relayout to channels-last so C sits in the 128-wide lane dim.
    x_cl = jnp.transpose(x, (0, 2, 3, 1))                        # (B, H, W, C)

    # --- WTConv2d (wt_levels=1) wavelet branch ---
    x_even = jnp.pad(x_cl, ((0, 0), (0, H % 2), (0, W % 2), (0, 0)))
    x_wt = haar_wt_nhwc(x_even)                                   # (B, h, w, 4C)
    zeros4c = jnp.zeros((4 * C,), x.dtype)
    x_wt = depthwise_conv_cl(x_wt, params["wave_w"], params["wave_scale"],
                             zeros4c, kernel_size)                # no bias, 0.1-scale
    x_tag = haar_iwt_nhwc(x_wt, C)[:, :H, :W, :]                  # (B, H, W, C)

    if stride == 1:
        # Fused: base depthwise + bias/scale + x_tag add + 1x1 pointwise matmul.
        out_cl = fused_base_add_pointwise(
            x_cl, x_tag, params["base_w"], params["base_scale"],
            params["base_bias"], params["point_w"], kernel_size)
    else:
        # TODO(synk): fold the stride subsample + pointwise into the fused kernel.
        base = depthwise_conv_cl(x_cl, params["base_w"], params["base_scale"],
                                 params["base_bias"], kernel_size)
        y = (base + x_tag)[:, ::stride, ::stride, :]
        out_cl = pointwise_conv_nhwc(y, params["point_w"])

    return jnp.transpose(out_cl, (0, 3, 1, 2))                    # back to NCHW


# ------------------------------- reference --------------------------------- #

def _ref_haar_wt(x):
    a = x[:, :, 0::2, 0::2]
    b = x[:, :, 0::2, 1::2]
    c = x[:, :, 1::2, 0::2]
    d = x[:, :, 1::2, 1::2]
    ll = 0.5 * (a + b + c + d)
    lh = 0.5 * (a + b - c - d)
    hl = 0.5 * (a - b + c - d)
    hh = 0.5 * (a - b - c + d)
    return jnp.stack([ll, lh, hl, hh], axis=2)


def _ref_haar_iwt(x):
    ll, lh, hl, hh = x[:, :, 0], x[:, :, 1], x[:, :, 2], x[:, :, 3]
    a = 0.5 * (ll + lh + hl + hh)
    b = 0.5 * (ll + lh - hl - hh)
    c = 0.5 * (ll - lh + hl - hh)
    d = 0.5 * (ll - lh - hl + hh)
    B, C, h, w = a.shape
    out = jnp.zeros((B, C, 2 * h, 2 * w), a.dtype)
    out = out.at[:, :, 0::2, 0::2].set(a)
    out = out.at[:, :, 0::2, 1::2].set(b)
    out = out.at[:, :, 1::2, 0::2].set(c)
    out = out.at[:, :, 1::2, 1::2].set(d)
    return out


def _ref_depthwise(x, w, scale, bias, K):
    B, C, H, W = x.shape
    pad_lo = (K - 1) // 2
    pad_hi = (K - 1) - pad_lo
    y = lax.conv_general_dilated(
        x, w.reshape(C, 1, K, K), window_strides=(1, 1),
        padding=[(pad_lo, pad_hi), (pad_lo, pad_hi)],
        dimension_numbers=("NCHW", "OIHW", "NCHW"), feature_group_count=C)
    return scale.reshape(1, C, 1, 1) * (y + bias.reshape(1, C, 1, 1))


def reference_forward(x, params, kernel_size, stride):
    B, C, H, W = x.shape
    x_even = jnp.pad(x, ((0, 0), (0, 0), (0, H % 2), (0, W % 2)))
    curr_x = _ref_haar_wt(x_even)
    sx = curr_x.shape
    curr_tag = curr_x.reshape(B, C * 4, sx[3], sx[4])
    curr_tag = _ref_depthwise(curr_tag, params["wave_w"], params["wave_scale"],
                              jnp.zeros((C * 4,), x.dtype), kernel_size)
    x_tag = _ref_haar_iwt(curr_tag.reshape(sx))[:, :, :H, :W]
    base = _ref_depthwise(x, params["base_w"], params["base_scale"],
                          params["base_bias"], kernel_size)
    y = base + x_tag
    if stride > 1:
        y = y[:, :, ::stride, ::stride]
    return jnp.einsum("bchw,oc->bohw", y, params["point_w"])


# ---------------------------------- main ------------------------------------ #

if __name__ == "__main__":
    B, C_IN, C_OUT, H, W = 2, 4, 8, 16, 16
    KSIZE, STRIDE = 3, 1

    key = jax.random.PRNGKey(0)
    k1, k2, k3, k4 = jax.random.split(key, 4)
    params = {
        # base_conv: depthwise Conv2d(C, C, K, groups=C, padding='same', bias=True)
        "base_w": 0.1 * jax.random.normal(k1, (C_IN, KSIZE, KSIZE), jnp.float32),
        "base_bias": 0.1 * jax.random.normal(k2, (C_IN,), jnp.float32),
        "base_scale": jnp.ones((C_IN,), jnp.float32),             # _ScaleModule init 1.0
        # wavelet_convs[0]: depthwise Conv2d(4C, 4C, K, groups=4C, bias=False)
        "wave_w": 0.1 * jax.random.normal(k3, (4 * C_IN, KSIZE, KSIZE), jnp.float32),
        "wave_scale": 0.1 * jnp.ones((4 * C_IN,), jnp.float32),   # _ScaleModule init 0.1
        # point_conv: Conv2d(C_IN, C_OUT, 1, bias=False)
        "point_w": 0.1 * jax.random.normal(k4, (C_OUT, C_IN), jnp.float32),
    }

    x = jax.random.normal(jax.random.PRNGKey(42), (B, C_IN, H, W), jnp.float32)

    out = depthwise_separable_conv_forward(x, params, KSIZE, STRIDE)
    out = jax.block_until_ready(out)

    ref = jax.block_until_ready(reference_forward(x, params, KSIZE, STRIDE))
    assert out.shape == (B, C_OUT, H // STRIDE, W // STRIDE), out.shape
    np.testing.assert_allclose(np.asarray(out), np.asarray(ref), rtol=1e-4, atol=1e-4)

    print("KERNEL_OK")
</pallas_src>

<mosaic_0001>
module attributes {stable_mosaic.version = 11 : i64} {
  func.func @_dw_conv_cl_kernel(%arg0: i32, %arg1: memref<1x8x8x16xf32, #tpu.memory_space<vmem>>, %arg2: memref<9x16xf32, #tpu.memory_space<vmem>>, %arg3: memref<1x16xf32, #tpu.memory_space<vmem>>, %arg4: memref<1x16xf32, #tpu.memory_space<vmem>>, %arg5: memref<1x8x8x16xf32, #tpu.memory_space<vmem>>, %arg6: memref<10x10x16xf32, #tpu.memory_space<vmem>>) attributes {dimension_semantics = [#tpu.dimension_semantics<parallel>], iteration_bounds = array<i64: 2>, scalar_prefetch = 0 : i64, scratch_operands = 1 : i64, tpu.core_type = #tpu.core_type<tc>, window_params = [{transform_indices = @transform_0, window_bounds = array<i64: 1, 8, 8, 16>}, {pipeline_mode = #tpu.pipeline_mode<synchronous>, transform_indices = @transform_1, window_bounds = array<i64: 9, 16>}, {pipeline_mode = #tpu.pipeline_mode<synchronous>, transform_indices = @transform_2, window_bounds = array<i64: 1, 16>}, {pipeline_mode = #tpu.pipeline_mode<synchronous>, transform_indices = @transform_3, window_bounds = array<i64: 1, 16>}, {transform_indices = @transform_4, window_bounds = array<i64: 1, 8, 8, 16>}]} {
    %cst = arith.constant 0.000000e+00 : f32
    %0 = vector.broadcast %cst : f32 to vector<10x10x16xf32>
    %c0 = arith.constant 0 : index
    %c0_0 = arith.constant 0 : index
    %c0_1 = arith.constant 0 : index
    %1 = vector.load %arg6[%c0, %c0_0, %c0_1] : memref<10x10x16xf32, #tpu.memory_space<vmem>>, vector<10x10x16xf32>
    tpu.vector_store %arg6[%c0, %c0_0, %c0_1], %0 {strides = array<i32>} : memref<10x10x16xf32, #tpu.memory_space<vmem>>, vector<10x10x16xf32>,
    %c0_2 = arith.constant 0 : index
    %c0_3 = arith.constant 0 : index
    %c0_4 = arith.constant 0 : index
    %c0_5 = arith.constant 0 : index
    %2 = vector.load %arg1[%c0_2, %c0_3, %c0_4, %c0_5] : memref<1x8x8x16xf32, #tpu.memory_space<vmem>>, vector<1x8x8x16xf32>
    %3 = vector.shape_cast %2 : vector<1x8x8x16xf32> to vector<8x8x16xf32>
    %c1 = arith.constant 1 : index
    %c1_6 = arith.constant 1 : index
    %c0_7 = arith.constant 0 : index
    %4 = vector.load %arg6[%c1, %c1_6, %c0_7] : memref<10x10x16xf32, #tpu.memory_space<vmem>>, vector<8x8x16xf32>
    tpu.vector_store %arg6[%c1, %c1_6, %c0_7], %3 {strides = array<i32>} : memref<10x10x16xf32, #tpu.memory_space<vmem>>, vector<8x8x16xf32>,
    %cst_8 = arith.constant 0.000000e+00 : f32
    %5 = vector.broadcast %cst_8 : f32 to vector<8x8x16xf32>
    %c0_9 = arith.constant 0 : index
    %c0_10 = arith.constant 0 : index
    %6 = vector.load %arg2[%c0_9, %c0_10] : memref<9x16xf32, #tpu.memory_space<vmem>>, vector<1x16xf32>
    %c0_11 = arith.constant 0 : index
    %c0_12 = arith.constant 0 : index
    %c0_13 = arith.constant 0 : index
    %7 = vector.load %arg6[%c0_11, %c0_12, %c0_13] : memref<10x10x16xf32, #tpu.memory_space<vmem>>, vector<8x8x16xf32>
    %8 = vector.shape_cast %6 : vector<1x16xf32> to vector<1x1x16xf32>
    %9 = vector.broadcast %8 : vector<1x1x16xf32> to vector<8x8x16xf32>
    %10 = arith.mulf %9, %7 : vector<8x8x16xf32>
    %11 = arith.addf %5, %10 : vector<8x8x16xf32>
    %c1_14 = arith.constant 1 : index
    %c0_15 = arith.constant 0 : index
    %12 = vector.load %arg2[%c1_14, %c0_15] : memref<9x16xf32, #tpu.memory_space<vmem>>, vector<1x16xf32>
    %c0_16 = arith.constant 0 : index
    %c1_17 = arith.constant 1 : index
    %c0_18 = arith.constant 0 : index
    %13 = vector.load %arg6[%c0_16, %c1_17, %c0_18] : memref<10x10x16xf32, #tpu.memory_space<vmem>>, vector<8x8x16xf32>
    %14 = vector.shape_cast %12 : vector<1x16xf32> to vector<1x1x16xf32>
    %15 = vector.broadcast %14 : vector<1x1x16xf32> to vector<8x8x16xf32>
    %16 = arith.mulf %15, %13 : vector<8x8x16xf32>
    %17 = arith.addf %11, %16 : vector<8x8x16xf32>
    %c2 = arith.constant 2 : index
    %c0_19 = arith.constant 0 : index
    %18 = vector.load %arg2[%c2, %c0_19] : memref<9x16xf32, #tpu.memory_space<vmem>>, vector<1x16xf32>
    %c0_20 = arith.constant 0 : index
    %c2_21 = arith.constant 2 : index
    %c0_22 = arith.constant 0 : index
    %19 = vector.load %arg6[%c0_20, %c2_21, %c0_22] : memref<10x10x16xf32, #tpu.memory_space<vmem>>, vector<8x8x16xf32>
    %20 = vector.shape_cast %18 : vector<1x16xf32> to vector<1x1x16xf32>
    %21 = vector.broadcast %20 : vector<1x1x16xf32> to vector<8x8x16xf32>
    %22 = arith.mulf %21, %19 : vector<8x8x16xf32>
    %23 = arith.addf %17, %22 : vector<8x8x16xf32>
    %c3 = arith.constant 3 : index
    %c0_23 = arith.constant 0 : index
    %24 = vector.load %arg2[%c3, %c0_23] : memref<9x16xf32, #tpu.memory_space<vmem>>, vector<1x16xf32>
    %c1_24 = arith.constant 1 : index
    %c0_25 = arith.constant 0 : index
    %c0_26 = arith.constant 0 : index
    %25 = vector.load %arg6[%c1_24, %c0_25, %c0_26] : memref<10x10x16xf32, #tpu.memory_space<vmem>>, vector<8x8x16xf32>
    %26 = vector.shape_cast %24 : vector<1x16xf32> to vector<1x1x16xf32>
    %27 = vector.broadcast %26 : vector<1x1x16xf32> to vector<8x8x16xf32>
    %28 = arith.mulf %27, %25 : vector<8x8x16xf32>
    %29 = arith.addf %23, %28 : vector<8x8x16xf32>
    %c4 = arith.constant 4 : index
    %c0_27 = arith.constant 0 : index
    %30 = vector.load %arg2[%c4, %c0_27] : memref<9x16xf32, #tpu.memory_space<vmem>>, vector<1x16xf32>
    %c1_28 = arith.constant 1 : index
    %c1_29 = arith.constant 1 : index
    %c0_30 = arith.constant 0 : index
    %31 = vector.load %arg6[%c1_28, %c1_29, %c0_30] : memref<10x10x16xf32, #tpu.memory_space<vmem>>, vector<8x8x16xf32>
    %32 = vector.shape_cast %30 : vector<1x16xf32> to vector<1x1x16xf32>
    %33 = vector.broadcast %32 : vector<1x1x16xf32> to vector<8x8x16xf32>
    %34 = arith.mulf %33, %31 : vector<8x8x16xf32>
    %35 = arith.addf %29, %34 : vector<8x8x16xf32>
    %c5 = arith.constant 5 : index
    %c0_31 = arith.constant 0 : index
    %36 = vector.load %arg2[%c5, %c0_31] : memref<9x16xf32, #tpu.memory_space<vmem>>, vector<1x16xf32>
    %c1_32 = arith.constant 1 : index
    %c2_33 = arith.constant 2 : index
    %c0_34 = arith.constant 0 : index
    %37 = vector.load %arg6[%c1_32, %c2_33, %c0_34] : memref<10x10x16xf32, #tpu.memory_space<vmem>>, vector<8x8x16xf32>
    %38 = vector.shape_cast %36 : vector<1x16xf32> to vector<1x1x16xf32>
    %39 = vector.broadcast %38 : vector<1x1x16xf32> to vector<8x8x16xf32>
    %40 = arith.mulf %39, %37 : vector<8x8x16xf32>
    %41 = arith.addf %35, %40 : vector<8x8x16xf32>
    %c6 = arith.constant 6 : index
    %c0_35 = arith.constant 0 : index
    %42 = vector.load %arg2[%c6, %c0_35] : memref<9x16xf32, #tpu.memory_space<vmem>>, vector<1x16xf32>
    %c2_36 = arith.constant 2 : index
    %c0_37 = arith.constant 0 : index
    %c0_38 = arith.constant 0 : index
    %43 = vector.load %arg6[%c2_36, %c0_37, %c0_38] : memref<10x10x16xf32, #tpu.memory_space<vmem>>, vector<8x8x16xf32>
    %44 = vector.shape_cast %42 : vector<1x16xf32> to vector<1x1x16xf32>
    %45 = vector.broadcast %44 : vector<1x1x16xf32> to vector<8x8x16xf32>
    %46 = arith.mulf %45, %43 : vector<8x8x16xf32>
    %47 = arith.addf %41, %46 : vector<8x8x16xf32>
    %c7 = arith.constant 7 : index
    %c0_39 = arith.constant 0 : index
    %48 = vector.load %arg2[%c7, %c0_39] : memref<9x16xf32, #tpu.memory_space<vmem>>, vector<1x16xf32>
    %c2_40 = arith.constant 2 : index
    %c1_41 = arith.constant 1 : index
    %c0_42 = arith.constant 0 : index
    %49 = vector.load %arg6[%c2_40, %c1_41, %c0_42] : memref<10x10x16xf32, #tpu.memory_space<vmem>>, vector<8x8x16xf32>
    %50 = vector.shape_cast %48 : vector<1x16xf32> to vector<1x1x16xf32>
    %51 = vector.broadcast %50 : vector<1x1x16xf32> to vector<8x8x16xf32>
    %52 = arith.mulf %51, %49 : vector<8x8x16xf32>
    %53 = arith.addf %47, %52 : vector<8x8x16xf32>
    %c8 = arith.constant 8 : index
    %c0_43 = arith.constant 0 : index
    %54 = vector.load %arg2[%c8, %c0_43] : memref<9x16xf32, #tpu.memory_space<vmem>>, vector<1x16xf32>
    %c2_44 = arith.constant 2 : index
    %c2_45 = arith.constant 2 : index
    %c0_46 = arith.constant 0 : index
    %55 = vector.load %arg6[%c2_44, %c2_45, %c0_46] : memref<10x10x16xf32, #tpu.memory_space<vmem>>, vector<8x8x16xf32>
    %56 = vector.shape_cast %54 : vector<1x16xf32> to vector<1x1x16xf32>
    %57 = vector.broadcast %56 : vector<1x1x16xf32> to vector<8x8x16xf32>
    %58 = arith.mulf %57, %55 : vector<8x8x16xf32>
    %59 = arith.addf %53, %58 : vector<8x8x16xf32>
    %c0_47 = arith.constant 0 : index
    %c0_48 = arith.constant 0 : index
    %60 = vector.load %arg3[%c0_47, %c0_48] : memref<1x16xf32, #tpu.memory_space<vmem>>, vector<1x16xf32>
    %c0_49 = arith.constant 0 : index
    %c0_50 = arith.constant 0 : index
    %61 = vector.load %arg4[%c0_49, %c0_50] : memref<1x16xf32, #tpu.memory_space<vmem>>, vector<1x16xf32>
    %62 = vector.shape_cast %61 : vector<1x16xf32> to vector<1x1x16xf32>
    %63 = vector.broadcast %62 : vector<1x1x16xf32> to vector<8x8x16xf32>
    %64 = arith.addf %59, %63 : vector<8x8x16xf32>
    %65 = vector.shape_cast %60 : vector<1x16xf32> to vector<1x1x16xf32>
    %66 = vector.broadcast %65 : vector<1x1x16xf32> to vector<8x8x16xf32>
    %67 = arith.mulf %66, %64 : vector<8x8x16xf32>
    %c0_51 = arith.constant 0 : index
    %c0_52 = arith.constant 0 : index
    %c0_53 = arith.constant 0 : index
    %c0_54 = arith.constant 0 : index
    %68 = vector.load %arg5[%c0_51, %c0_52, %c0_53, %c0_54] : memref<1x8x8x16xf32, #tpu.memory_space<vmem>>, vector<1x8x8x16xf32>
    %69 = vector.shape_cast %68 : vector<1x8x8x16xf32> to vector<8x8x16xf32>
    %70 = vector.shape_cast %67 : vector<8x8x16xf32> to vector<1x8x8x16xf32>
    tpu.vector_store %arg5[%c0_51, %c0_52, %c0_53, %c0_54], %70 {strides = array<i32>} : memref<1x8x8x16xf32, #tpu.memory_space<vmem>>, vector<1x8x8x16xf32>,
    return
  }
  func.func @transform_0(%arg0: i32) -> (i32, i32, i32, i32) {
    %c0_i32 = arith.constant 0 : i32
    %c0_i32_0 = arith.constant 0 : i32
    %c0_i32_1 = arith.constant 0 : i32
    %c0_i32_2 = arith.constant 0 : i32
    return %arg0, %c0_i32, %c0_i32_0, %c0_i32_1 : i32, i32, i32, i32
  }
  func.func @transform_1(%arg0: i32) -> (i32, i32) {
    %c0_i32 = arith.constant 0 : i32
    %c0_i32_0 = arith.constant 0 : i32
    %c0_i32_1 = arith.constant 0 : i32
    return %c0_i32, %c0_i32_0 : i32, i32
  }
  func.func @transform_2(%arg0: i32) -> (i32, i32) {
    %c0_i32 = arith.constant 0 : i32
    %c0_i32_0 = arith.constant 0 : i32
    %c0_i32_1 = arith.constant 0 : i32
    return %c0_i32, %c0_i32_0 : i32, i32
  }
  func.func @transform_3(%arg0: i32) -> (i32, i32) {
    %c0_i32 = arith.constant 0 : i32
    %c0_i32_0 = arith.constant 0 : i32
    %c0_i32_1 = arith.constant 0 : i32
    return %c0_i32, %c0_i32_0 : i32, i32
  }
  func.func @transform_4(%arg0: i32) -> (i32, i32, i32, i32) {
    %c0_i32 = arith.constant 0 : i32
    %c0_i32_0 = arith.constant 0 : i32
    %c0_i32_1 = arith.constant 0 : i32
    %c0_i32_2 = arith.constant 0 : i32
    return %arg0, %c0_i32, %c0_i32_0, %c0_i32_1 : i32, i32, i32, i32
  }
}

</mosaic_0001>

<bundles_post_ra>
// kernel: tpu_custom_call.1
= control target key start
LH: loop header
LB: loop body
LE: loop exit
PB: predicated region body
PF: predicated region fallthrough
CT: control target
= control target key end

     0   :  { %9 = vsyncpa [#allocation4], 0  ;;  %s1305_s0 = inlined_call_operand.hbm [shape: f32[2,8,8,16], index: 0, kind: input, shape index: {}]   ;;  %s1306_s1 = inlined_call_operand.hbm [shape: f32[9,16], index: 1, kind: input, shape index: {}]   ;;  %s1307_s2 = inlined_call_operand.vmem [shape: f32[1,16], index: 2, kind: input, shape index: {}]   ;;  %s1308_s3 = inlined_call_operand.vmem [shape: f32[1,16], index: 3, kind: input, shape index: {}]   ;;  %s1309_s4 = inlined_call_operand.hbm [shape: f32[2,8,8,16], index: 4, kind: output, shape index: {}]  }
   0x1   :  { %11 = vsyncpa [#allocation4 + $0x1], 0 }
   0x2   :  { %12 = vsyncpa [#allocation7], 0 }
   0x3   :  { %13 = vsyncpa [#allocation5], 0 }
   0x4   :  { %15 = vsyncpa [#allocation5 + $0x1], 0  ;;  %s921_s15 = smov 0   ;;  %s923_s16 = smov 0  }
   0x5   :  { %s925_s17 = smov 0   ;;  %s927_s18 = smov 0  }
   0x6 LB: > { %s942_s19 = sadd.s32 4294967295, %s886_s18   ;;  %s667_s20 = sadd.s32 4294967294, %s886_s18   ;;  %s886_s18 = sphi %s927_s18, %s1329_s18   ;;  %s882_s17 = sphi %s925_s17, %s1328_s17   ;;  %s878_s16 = sphi %s923_s16, %s1327_s16   ;;  %s874_s15 = sphi %s921_s15, %s1326_s15  }
   0x7   : > { %p41_p0 = scmp.ne.s32.totalorder %s878_s16, %s874_s15  ;;  %p1310_p1 = scmp.eq.s32.totalorder %s942_s19, 0 }
   0x8   : > { %p134_p3 = scmp.eq.s32.totalorder %s667_s20, 1  ;;  %p668_p5 = scmp.ge.s32.totalorder %s886_s18, 1 }
   0x9   : > { %p951_p4 = por %p1310_p1, %p41_p0  ;;  %p141_p7 = scmp.lt.s32.totalorder %s886_s18, 3 }
   0xa   : > { %p956_p6 = por %p134_p3, %p41_p0  ;;  %s888_s24 = smov [#allocation6]  }
   0xb   : > { %s1313_s21 = scalar_select %p951_p4, 1, 0 }
   0xc   : > { %s1314_s22 = scalar_select %p956_p6, 1, 0 }
   0xd   : > { %p961_p8 = pnand %p668_p5, %p141_p7  ;;  %s153_s25 = sshll.u32 %s888_s24, 4  ;;  %s965_s25 = int_to_ptr.vmem [resolvable:$true] %s153_s25 }
   0xe   : > { %s977_s27 = sadd.s32 1, %s886_s18   ;;  %s28_s28 = sadd.s32 1, %s882_s17 }
   0xf   : > { %s1315_s23 = scalar_select %p961_p8, 1, 0 }
  0x10   : > { %p704_p9 = pneg %p961_p8  ;;  %s25_s29 = ssub.s32 %s886_s18, %s977_s27 }
  0x11   : > { %s758_s6 = scalar_lea.hbm %s1306_s1, 256 }
  0x12   : > { %p972_p11 = pnand %p704_p9, %p1310_p1  ;;  %p759_p12 = scmp.ne.s32.totalorder %s1306_s1, %s758_s6 }
  0x13   : > { %p765_p5 = scmp.lt.u32.totalorder %s758_s6, %s1306_s1 }
  0x14   : > { %p760_p13 = pneg %p972_p11 }
  0x16   : > { %p761_p0 = pnand %p760_p13, %p759_p12 }
  0x18   : > { %p762_p3 = pneg %p761_p0 }
  0x1a   : > { %p767_p7 = pnand %p765_p5, %p762_p3 }
  0x1c   : > { %770 = shalt.err (!%p767_p7)
}
  0x1d   : > { %s771_s11 = scalar_lea.vmem %s965_s25, 256  ;;  %p779_p2 = scmp.lt.s32.totalorder %s965_s25, %s965_s25 }
  0x1e   : > { %p772_p9 = scmp.ne.s32.totalorder %s965_s25, %s771_s11  ;;  %p780_p6 = scmp.lt.s32.totalorder %s771_s11, %s771_s11 }
  0x20   : > { %p774_p10 = pnand %p772_p9, %p760_p13  ;;  %p781_p4 = por %p780_p6, %p779_p2 }
  0x22   : > { %p775_p1 = pneg %p774_p10 }
  0x24   : > { %p782_p8 = pnand %p781_p4, %p775_p1 }
  0x26   : > { %785 = shalt.err (!%p782_p8)
}
  0x27   : > { %s889_s12 = smov 128   ;;  %s890_s13 = smov 8  }
  0x28   : > { %707 = dma.hbm_to_vmem [thread:$0]  (!%p972_p11), %s1306_s1, 256, %s965_s25, [#allocation7], %s889_s12, %s889_s12, %s890_s13  }
  0x29   : > { %p26_p1 = scmp.eq.s32.totalorder %s25_s29, 0  ;;  %p35_p2 = scmp.ne.s32.totalorder %s882_s17, %s878_s16 }
  0x2a   : > { %p36_p4 = scmp.eq.s32.totalorder %s886_s18, 0  ;;  %p717_p6 = scmp.lt.s32.totalorder %s886_s18, 2 }
  0x2b   : > { %s1011_s24 = scalar_select %p26_p1, %s882_s17, %s28_s28  }
  0x2c   : > { %p37_p8 = por %p36_p4, %p35_p2  ;;  %p1317_p10 = scmp.eq.s32.totalorder %s942_s19, 1 }
  0x2d   : > { %s173_s26 = sand.u32 1, %s882_s17   ;;  %s694_s5 = sshll.u32 %s886_s18, 10 }
  0x2e   : > { %p1015_p12 = por %p1317_p10, %p35_p2  ;;  %s671_s6 = sshll.u32 %s173_s26, 6 }
  0x2f   : > { %s1024_s9 = scalar_lea.hbm %s1305_s0, %s694_s5  ;;  %s177_s25 = scalar_lea.vmem [#allocation3], %s671_s6 }
  0x30   : > { %s184_s28 = sshll.u32 %s177_s25, 4  ;;  %p1026_p11 = pnand %p717_p6, %p37_p8  ;;  %s1030_s28 = int_to_ptr.vmem [resolvable:$true] %s184_s28 }
  0x31   : > { %s1032_s10 = scalar_lea.sflag [#allocation4], %s173_s26  ;;  %s786_s11 = scalar_lea.hbm %s1024_s9, 1024 }
  0x32   : > { %p787_p13 = scmp.ne.s32.totalorder %s1024_s9, %s786_s11  ;;  %p788_p0 = pneg %p1026_p11 }
  0x33   : > { %s791_s5 = scalar_lea.hbm %s1305_s0, 2048  ;;  %p792_p7 = scmp.lt.u32.totalorder %s1024_s9, %s1305_s0 }
  0x34   : > { %p789_p3 = pnand %p788_p0, %p787_p13  ;;  %p793_p9 = scmp.lt.u32.totalorder %s791_s5, %s786_s11 }
  0x35   : > { %p795_p2 = scmp.lt.u32.totalorder %s786_s11, %s1024_s9 }
  0x36   : > { %p790_p5 = pneg %p789_p3  ;;  %p794_p1 = por %p793_p9, %p792_p7 }
  0x38   : > { %p796_p4 = por %p795_p2, %p794_p1 }
  0x3a   : > { %p797_p6 = pnand %p796_p4, %p790_p5 }
  0x3c   : > { %800 = shalt.err (!%p797_p6)
}
  0x3d   : > { %s801_s26 = scalar_lea.vmem %s1030_s28, 1024  ;;  %s891_s8 = smov [#allocation3]  }
  0x3e   : > { %p802_p8 = scmp.ne.s32.totalorder %s1030_s28, %s801_s26  ;;  %s806_s25 = sshll.u32 %s891_s8, 4  ;;  %s807_s25 = int_to_ptr.vmem [resolvable:$false] %s806_s25 }
  0x3f   : > { %s808_s14 = scalar_lea.vmem %s807_s25, 2048  ;;  %p809_p3 = scmp.lt.s32.totalorder %s1030_s28, %s807_s25 }
  0x40   : > { %p804_p10 = pnand %p802_p8, %p788_p0  ;;  %p810_p7 = scmp.lt.s32.totalorder %s808_s14, %s801_s26 }
  0x42   : > { %p805_p13 = pneg %p804_p10  ;;  %p811_p9 = por %p810_p7, %p809_p3 }
  0x44   : > { %p812_p1 = pnand %p811_p9, %p805_p13 }
  0x46   : > { %815 = shalt.err (!%p812_p1)
}
  0x47   : > { %711 = dma.hbm_to_vmem [thread:$0]  (!%p1026_p11), %s1024_s9, 1024, %s1030_s28, %s1032_s10, %s889_s12, %s889_s12, %s890_s13  }
  0x48   : > { %p1320_p0 = scmp.ne.s32.totalorder %s1315_s23, 0 }
  0x49   : > { %s1066_s11 = sand.u32 (!%p1320_p0), 1, %s878_s16   ;;  %p1321_p5 = scmp.ne.s32.totalorder (!%p1320_p0), %s1313_s21, 0 }
  0x4a   : > { %196 = sbr.rel (%p1320_p0) target bundleno = 168 (0xa8), region = 36  ;;  %s675_s20 = sshll.u32 (!%p1320_p0), %s1066_s11, 6 }
  0x4b   : > { %s199_s5 = scalar_lea.sflag (!%p1320_p0), [#allocation4], %s1066_s11  ;;  %s1072_s29 = scalar_lea.vmem (!%p1320_p0), [#allocation3], %s675_s20 }
  0x51   : > { %861 = dma.done.wait (%p1321_p5), %s199_s5, 1024  }
  0x52   : > { %863 = vsyncadd (%p1321_p5), %s199_s5, 4294966272  ;;  %p1322_p11 = scmp.eq.s32.totalorder %s942_s19, 0 }
  0x54   : > { %865 = dma.done.wait (%p1322_p11), [#allocation7], 256   ;;  %p1323_p2 = pmov %p1322_p11 }
  0x55   : > { %vm231_vm0 = vcmask 130048   ;;  %vm233_vm1 = vcmask 123904   ;;  %v892_v0 = vmov 0.0   ;;  %v253_v1 = vld [vmem:[%s1072_s29] sm:$0xff]  ;;  %v254_v2 = vld [vmem:[%s1072_s29 + $0x8] sm:$0xff]  ;;  %v255_v3 = vld [vmem:[%s1072_s29 + $0x10] sm:$0xff] }
  0x56   : > { %867 = vsyncadd (%p1323_p2), [#allocation7], 4294967040  ;;  %232 = vst.msk [vmem:[#allocation2] sm:$0xff] %vm231_vm0, %v892_v0  ;;  %v256_v4 = vld [vmem:[%s1072_s29 + $0x18] sm:$0xff]  ;;  %v257_v5 = vld [vmem:[%s1072_s29 + $0x20] sm:$0xff]  ;;  %s1190_s9 = scalar_lea.vmem [#allocation8], %s675_s20 }
  0x57   : > { %235 = vst.msk [vmem:[#allocation2 + $0x10] sm:$0xff] %vm231_vm0, %v892_v0  ;;  %237 = vst.msk [vmem:[#allocation2 + $0x20] sm:$0xff] %vm231_vm0, %v892_v0  ;;  %v258_v6 = vld [vmem:[%s1072_s29 + $0x28] sm:$0xff]  ;;  %v259_v7 = vld [vmem:[%s1072_s29 + $0x30] sm:$0xff]  ;;  %s584_s28 = sshll.u32 %s1190_s9, 4  ;;  %s695_s10 = sshll.u32 %s942_s19, 10  ;;  %s1253_s28 = int_to_ptr.vmem [resolvable:$true] %s584_s28 }
  0x58   : > { %239 = vst.msk [vmem:[#allocation2 + $0x30] sm:$0xff] %vm231_vm0, %v892_v0  ;;  %241 = vst.msk [vmem:[#allocation2 + $0x40] sm:$0xff] %vm231_vm0, %v892_v0  ;;  %v260_v8 = vld [vmem:[%s1072_s29 + $0x38] sm:$0xff]  ;;  %v1116_v9 = vld [vmem:[#allocation6] ss:$0 sm:$0xff]  ;;  %s1258_s26 = scalar_lea.hbm %s1309_s4, %s695_s10  ;;  %s571_s8 = scalar_lea.sflag [#allocation5], %s1066_s11 }
  0x59   : > { %243 = vst.msk [vmem:[#allocation2 + $0x50] sm:$0xff] %vm231_vm0, %v892_v0  ;;  %245 = vst.msk [vmem:[#allocation2 + $0x60] sm:$0xff] %vm231_vm0, %v892_v0  ;;  %v1120_v11 = vld [vmem:[#allocation6 + $0x1] ss:$0 sm:$0xff]  ;;  %v1124_v15 = vld [vmem:[#allocation6 + $0x2] ss:$0 sm:$0xff] }
  0x5a   : > { %247 = vst.msk [vmem:[#allocation2 + $0x70] sm:$0xff] %vm231_vm0, %v892_v0  ;;  %249 = vst.msk [vmem:[#allocation2 + $0x80] sm:$0xff] %vm231_vm0, %v892_v0  ;;  %v1127_v19 = vld [vmem:[#allocation6 + $0x3] ss:$0 sm:$0xff]  ;;  %v1129_v20 = vld [vmem:[#allocation6 + $0x4] ss:$0 sm:$0xff] }
  0x5b   : > { %251 = vst.msk [vmem:[#allocation2 + $0x90] sm:$0xff] %vm231_vm0, %v892_v0  ;;  %v1131_v24 = vld [vmem:[#allocation6 + $0x5] ss:$0 sm:$0xff]  ;;  %v1134_v27 = vld [vmem:[#allocation6 + $0x6] ss:$0 sm:$0xff]  ;;  %s816_s19 = scalar_lea.vmem %s1253_s28, 1024 }
  0x5c   : > { %234 = vst.msk [vmem:[#allocation2 + $0x8] sm:$0x3] %vm233_vm1, %v892_v0  ;;  %236 = vst.msk [vmem:[#allocation2 + $0x18] sm:$0x3] %vm233_vm1, %v892_v0  ;;  %v1137_v30 = vld [vmem:[#allocation6 + $0x7] ss:$0 sm:$0xff]  ;;  %p817_p4 = scmp.ne.s32.totalorder %s1253_s28, %s816_s19 }
  0x5d   : > { %238 = vst.msk [vmem:[#allocation2 + $0x28] sm:$0x3] %vm233_vm1, %v892_v0  ;;  %240 = vst.msk [vmem:[#allocation2 + $0x38] sm:$0x3] %vm233_vm1, %v892_v0  ;;  %v271_v10 = vld [vmem:[#allocation2] sm:$0xff]  ;;  %s893_s25 = smov [#allocation8]  }
  0x5e   : > { %242 = vst.msk [vmem:[#allocation2 + $0x48] sm:$0x3] %vm233_vm1, %v892_v0  ;;  %244 = vst.msk [vmem:[#allocation2 + $0x58] sm:$0x3] %vm233_vm1, %v892_v0  ;;  %v283_v13 = vmul.f32 %v1116_v9, %v271_v10  ;;  %v1141_v35 = vld [vmem:[#allocation6 + $0x8] ss:$0 sm:$0xff]  ;;  %p818_p6 = pnand %p817_p4, %p1015_p12 }
  0x5f   : > { %246 = vst.msk [vmem:[#allocation2 + $0x68] sm:$0x3] %vm233_vm1, %v892_v0  ;;  %248 = vst.msk [vmem:[#allocation2 + $0x78] sm:$0x3] %vm233_vm1, %v892_v0  ;;  %s820_s14 = sshll.u32 %s893_s25, 4  ;;  %s821_s14 = int_to_ptr.vmem [resolvable:$false] %s820_s14 }
  0x60   : > { %250 = vst.msk [vmem:[#allocation2 + $0x88] sm:$0x3] %vm233_vm1, %v892_v0  ;;  %252 = vst.msk [vmem:[#allocation2 + $0x98] sm:$0x3] %vm233_vm1, %v892_v0  ;;  %p819_p8 = pneg %p818_p6  ;;  %s822_s20 = scalar_lea.vmem %s821_s14, 2048 }
  0x61   : > { %262 = vst.msk [vmem:[#allocation2 + $0x11] sm:$0xff] %vm231_vm0, %v253_v1  ;;  %263 = vst.msk [vmem:[#allocation2 + $0x21] sm:$0xff] %vm231_vm0, %v254_v2  ;;  %p823_p10 = scmp.lt.s32.totalorder %s1253_s28, %s821_s14  ;;  %p824_p13 = scmp.lt.s32.totalorder %s822_s20, %s816_s19 }
  0x62   : > { %264 = vst.msk [vmem:[#allocation2 + $0x31] sm:$0xff] %vm231_vm0, %v255_v3  ;;  %265 = vst.msk [vmem:[#allocation2 + $0x41] sm:$0xff] %vm231_vm0, %v256_v4 }
  0x63   : > { %266 = vst.msk [vmem:[#allocation2 + $0x51] sm:$0xff] %vm231_vm0, %v257_v5  ;;  %267 = vst.msk [vmem:[#allocation2 + $0x61] sm:$0xff] %vm231_vm0, %v258_v6  ;;  %v300_v12 = vld [vmem:[#allocation2 + $0x1] sm:$0xff]  ;;  %p825_p3 = por %p824_p13, %p823_p10 }
  0x64   : > { %268 = vst.msk [vmem:[#allocation2 + $0x71] sm:$0xff] %vm231_vm0, %v259_v7  ;;  %269 = vst.msk [vmem:[#allocation2 + $0x81] sm:$0xff] %vm231_vm0, %v260_v8  ;;  %v312_v14 = vmul.f32 %v1120_v11, %v300_v12  ;;  %v329_v16 = vld [vmem:[#allocation2 + $0x2] sm:$0xff] }
  0x65   : > { %v341_v17 = vmul.f32 %v1124_v15, %v329_v16  ;;  %p826_p7 = pnand %p825_p3, %p819_p8 }
  0x66   : > { %v320_v18 = vadd.f32 %v312_v14, %v283_v13  ;;  %v1166_v13 = vld [vmem:[%s1308_s3] ss:$0 sm:$0xff] }
  0x68   : > { %v349_v21 = vadd.f32 %v341_v17, %v320_v18  ;;  %v358_v22 = vld [vmem:[#allocation2 + $0x10] sm:$0xff]  ;;  %v446_v28 = vld [vmem:[#allocation2 + $0x20] sm:$0xff] }
  0x69   : > { %v387_v23 = vld [vmem:[#allocation2 + $0x11] sm:$0xff]  ;;  %v370_v25 = vmul.f32 %v1127_v19, %v358_v22  ;;  %v284_v29 = vmul.f32 %v1116_v9, %v358_v22  ;;  %v475_v31 = vld [vmem:[#allocation2 + $0x21] sm:$0xff]  ;;  %v458_v38 = vmul.f32 %v1134_v27, %v446_v28  ;;  %v285_v45 = vmul.f32 %v1116_v9, %v446_v28 }
  0x6a   : > { %v416_v26 = vld [vmem:[#allocation2 + $0x12] sm:$0xff]  ;;  %v313_v32 = vmul.f32 %v1120_v11, %v387_v23  ;;  %v399_v34 = vmul.f32 %v1129_v20, %v387_v23  ;;  %v504_v36 = vld [vmem:[#allocation2 + $0x22] sm:$0xff]  ;;  %v487_v42 = vmul.f32 %v1137_v30, %v475_v31  ;;  %v314_v46 = vmul.f32 %v1120_v11, %v475_v31 }
  0x6b   : > { %v378_v33 = vadd.f32 %v370_v25, %v349_v21  ;;  %v428_v37 = vmul.f32 %v1131_v24, %v416_v26  ;;  %v342_v40 = vmul.f32 %v1124_v15, %v416_v26  ;;  %v447_v43 = vld [vmem:[#allocation2 + $0x30] sm:$0xff]  ;;  %v516_v47 = vmul.f32 %v1141_v35, %v504_v36  ;;  %v448_v63 = vld [vmem:[#allocation2 + $0x40] sm:$0xff] }
  0x6c   : > { %v321_v39 = vadd.f32 %v313_v32, %v284_v29  ;;  %v476_v44 = vld [vmem:[#allocation2 + $0x31] sm:$0xff]  ;;  %v371_v49 = vmul.f32 %v1127_v19, %v446_v28  ;;  %v400_v50 = vmul.f32 %v1129_v20, %v475_v31  ;;  %v429_v52 = vmul.f32 %v1131_v24, %v504_v36  ;;  %v477_v5 = vld [vmem:[#allocation2 + $0x41] sm:$0xff]  ;;  %v1175_v28 = vld [vmem:[%s1307_s2] ss:$0 sm:$0xff] }
  0x6d   : > { %v407_v41 = vadd.f32 %v399_v34, %v378_v33  ;;  %v505_v53 = vld [vmem:[#allocation2 + $0x32] sm:$0xff]  ;;  %v322_v54 = vadd.f32 %v314_v46, %v285_v45  ;;  %v343_v55 = vmul.f32 %v1124_v15, %v504_v36  ;;  %v459_v57 = vmul.f32 %v1134_v27, %v447_v43  ;;  %v506_v8 = vld [vmem:[#allocation2 + $0x42] sm:$0xff] }
  0x6e   : > { %v350_v48 = vadd.f32 %v342_v40, %v321_v39  ;;  %v488_v58 = vmul.f32 %v1137_v30, %v476_v44  ;;  %v286_v59 = vmul.f32 %v1116_v9, %v447_v43  ;;  %v372_v62 = vmul.f32 %v1127_v19, %v447_v43  ;;  %v449_v25 = vld [vmem:[#allocation2 + $0x50] sm:$0xff] }
  0x6f   : > { %v436_v51 = vadd.f32 %v428_v37, %v407_v41  ;;  %v351_v61 = vadd.f32 %v343_v55, %v322_v54  ;;  %v315_v0 = vmul.f32 %v1120_v11, %v476_v44  ;;  %v517_v2 = vmul.f32 %v1141_v35, %v505_v53 }
  0x70   : > { %v379_v56 = vadd.f32 %v371_v49, %v350_v48  ;;  %v401_v3 = vmul.f32 %v1129_v20, %v476_v44  ;;  %v430_v4 = vmul.f32 %v1131_v24, %v505_v53  ;;  %v344_v12 = vmul.f32 %v1124_v15, %v505_v53 }
  0x71   : > { %v466_v60 = vadd.f32 %v458_v38, %v436_v51  ;;  %v380_v7 = vadd.f32 %v372_v62, %v351_v61  ;;  %v323_v10 = vadd.f32 %v315_v0, %v286_v59  ;;  %v460_v16 = vmul.f32 %v1134_v27, %v448_v63  ;;  %v478_v38 = vld [vmem:[#allocation2 + $0x51] sm:$0xff] }
  0x72   : > { %v408_v1 = vadd.f32 %v400_v50, %v379_v56  ;;  %v373_v17 = vmul.f32 %v1127_v19, %v448_v63  ;;  %v287_v18 = vmul.f32 %v1116_v9, %v448_v63  ;;  %v316_v26 = vmul.f32 %v1120_v11, %v477_v5 }
  0x73   : > { %v495_v6 = vadd.f32 %v487_v42, %v466_v60  ;;  %v409_v22 = vadd.f32 %v401_v3, %v380_v7  ;;  %v352_v23 = vadd.f32 %v344_v12, %v323_v10  ;;  %v489_v31 = vmul.f32 %v1137_v30, %v477_v5 }
  0x74   : > { %v437_v14 = vadd.f32 %v429_v52, %v408_v1  ;;  %v402_v32 = vmul.f32 %v1129_v20, %v477_v5  ;;  %v345_v33 = vmul.f32 %v1124_v15, %v506_v8  ;;  %v324_v39 = vadd.f32 %v316_v26, %v287_v18  ;;  %v451_v18 = vld [vmem:[#allocation2 + $0x70] sm:$0xff] }
  0x75   : > { %v524_v21 = vadd.f32 %v516_v47, %v495_v6  ;;  %v438_v36 = vadd.f32 %v430_v4, %v409_v22  ;;  %v381_v37 = vadd.f32 %v373_v17, %v352_v23  ;;  %v518_v41 = vmul.f32 %v1141_v35, %v506_v8  ;;  %v507_v47 = vld [vmem:[#allocation2 + $0x52] sm:$0xff] }
  0x76   : > { %v467_v29 = vadd.f32 %v459_v57, %v437_v14  ;;  %v431_v42 = vmul.f32 %v1131_v24, %v506_v8  ;;  %v374_v43 = vmul.f32 %v1127_v19, %v449_v25  ;;  %v353_v48 = vadd.f32 %v345_v33, %v324_v39  ;;  %v450_v57 = vld [vmem:[#allocation2 + $0x60] sm:$0xff]  ;;  %v480_v33 = vld [vmem:[#allocation2 + $0x71] sm:$0xff] }
  0x77   : > { %v540_v34 = vadd.f32 %v1166_v13, %v524_v21  ;;  %v468_v45 = vadd.f32 %v460_v16, %v438_v36  ;;  %v410_v46 = vadd.f32 %v402_v32, %v381_v37  ;;  %v461_v50 = vmul.f32 %v1134_v27, %v449_v25  ;;  %v508_v14 = vld [vmem:[#allocation2 + $0x62] sm:$0xff] }
  0x78   : > { %v496_v40 = vadd.f32 %v488_v58, %v467_v29  ;;  %v288_v51 = vmul.f32 %v1116_v9, %v449_v25  ;;  %v317_v52 = vmul.f32 %v1120_v11, %v478_v38  ;;  %v382_v55 = vadd.f32 %v374_v43, %v353_v48 }
  0x79   : > { %v554_v44 = vmul.f32 %v1175_v28, %v540_v34  ;;  %v497_v53 = vadd.f32 %v489_v31, %v468_v45  ;;  %v439_v54 = vadd.f32 %v431_v42, %v410_v46  ;;  %v403_v56 = vmul.f32 %v1129_v20, %v478_v38  ;;  %v509_v42 = vld [vmem:[#allocation2 + $0x72] sm:$0xff]  ;;  %v452_v45 = vld [vmem:[#allocation2 + $0x80] sm:$0xff] }
  0x7a   : > { %v525_v49 = vadd.f32 %v517_v2, %v496_v40  ;;  %v490_v59 = vmul.f32 %v1137_v30, %v478_v38  ;;  %v325_v60 = vadd.f32 %v317_v52, %v288_v51  ;;  %v346_v61 = vmul.f32 %v1124_v15, %v507_v47  ;;  %v479_v2 = vld [vmem:[#allocation2 + $0x61] sm:$0xff] }
  0x7b   : > { %562 = vst.msk [vmem:[%s1190_s9] sm:$0xff] %vm231_vm0, %v554_v44  ;;  %v526_v62 = vadd.f32 %v518_v41, %v497_v53  ;;  %v469_v63 = vadd.f32 %v461_v50, %v439_v54  ;;  %v411_v0 = vadd.f32 %v403_v56, %v382_v55  ;;  %v432_v1 = vmul.f32 %v1131_v24, %v507_v47 }
  0x7c   : > { %v541_v58 = vadd.f32 %v1166_v13, %v525_v49  ;;  %v519_v4 = vmul.f32 %v1141_v35, %v507_v47  ;;  %v354_v5 = vadd.f32 %v346_v61, %v325_v60  ;;  %v375_v6 = vmul.f32 %v1127_v19, %v450_v57  ;;  %v481_v60 = vld [vmem:[#allocation2 + $0x81] sm:$0xff] }
  0x7d   : > { %v542_v7 = vadd.f32 %v1166_v13, %v526_v62  ;;  %v498_v8 = vadd.f32 %v490_v59, %v469_v63  ;;  %v440_v10 = vadd.f32 %v432_v1, %v411_v0  ;;  %v462_v12 = vmul.f32 %v1134_v27, %v450_v57 }
  0x7e   : > { %v555_v3 = vmul.f32 %v1175_v28, %v541_v58  ;;  %v383_v16 = vadd.f32 %v375_v6, %v354_v5  ;;  %v404_v17 = vmul.f32 %v1129_v20, %v479_v2  ;;  %v289_v21 = vmul.f32 %v1116_v9, %v450_v57 }
  0x7f   : > { %v318_v22 = vmul.f32 %v1120_v11, %v479_v2  ;;  %v556_v23 = vmul.f32 %v1175_v28, %v542_v7  ;;  %v527_v25 = vadd.f32 %v519_v4, %v498_v8  ;;  %v470_v26 = vadd.f32 %v462_v12, %v440_v10 }
  0x80   : > { %563 = vst.msk [vmem:[%s1190_s9 + $0x8] sm:$0xff] %vm231_vm0, %v555_v3  ;;  %v491_v29 = vmul.f32 %v1137_v30, %v479_v2  ;;  %v412_v31 = vadd.f32 %v404_v17, %v383_v16  ;;  %v433_v32 = vmul.f32 %v1131_v24, %v508_v14  ;;  %v347_v36 = vmul.f32 %v1124_v15, %v508_v14  ;;  %v510_v2 = vld [vmem:[#allocation2 + $0x82] sm:$0xff]  ;;  %v453_v3 = vld [vmem:[#allocation2 + $0x90] sm:$0xff] }
  0x81   : > { %v326_v34 = vadd.f32 %v318_v22, %v289_v21  ;;  %564 = vst.msk [vmem:[%s1190_s9 + $0x10] sm:$0xff] %vm231_vm0, %v556_v23  ;;  %v543_v37 = vadd.f32 %v1166_v13, %v527_v25  ;;  %v520_v39 = vmul.f32 %v1141_v35, %v508_v14  ;;  %v463_v40 = vmul.f32 %v1134_v27, %v451_v18  ;;  %v482_v17 = vld [vmem:[#allocation2 + $0x91] sm:$0xff] }
  0x82   : > { %v499_v38 = vadd.f32 %v491_v29, %v470_v26  ;;  %v441_v41 = vadd.f32 %v433_v32, %v412_v31  ;;  %v376_v44 = vmul.f32 %v1127_v19, %v451_v18  ;;  %v290_v46 = vmul.f32 %v1116_v9, %v451_v18  ;;  %v511_v21 = vld [vmem:[#allocation2 + $0x92] sm:$0xff] }
  0x83   : > { %v355_v43 = vadd.f32 %v347_v36, %v326_v34  ;;  %v557_v47 = vmul.f32 %v1175_v28, %v543_v37  ;;  %v319_v49 = vmul.f32 %v1120_v11, %v480_v33  ;;  %v492_v51 = vmul.f32 %v1137_v30, %v480_v33 }
  0x84   : > { %v528_v48 = vadd.f32 %v520_v39, %v499_v38  ;;  %v471_v50 = vadd.f32 %v463_v40, %v441_v41  ;;  %v405_v53 = vmul.f32 %v1129_v20, %v480_v33  ;;  %v348_v56 = vmul.f32 %v1124_v15, %v509_v42 }
  0x85   : > { %v384_v52 = vadd.f32 %v376_v44, %v355_v43  ;;  %565 = vst.msk [vmem:[%s1190_s9 + $0x18] sm:$0xff] %vm231_vm0, %v557_v47  ;;  %v327_v55 = vadd.f32 %v319_v49, %v290_v46  ;;  %v377_v9 = vmul.f32 %v1127_v19, %v452_v45  ;;  %v521_v58 = vmul.f32 %v1141_v35, %v509_v42 }
  0x86   : > { %v544_v54 = vadd.f32 %v1166_v13, %v528_v48  ;;  %v500_v57 = vadd.f32 %v492_v51, %v471_v50  ;;  %v434_v59 = vmul.f32 %v1131_v24, %v509_v42  ;;  %v464_v1 = vmul.f32 %v1134_v27, %v452_v45 }
  0x87   : > { %v413_v11 = vadd.f32 %v405_v53, %v384_v52  ;;  %v356_v62 = vadd.f32 %v348_v56, %v327_v55  ;;  %v406_v19 = vmul.f32 %v1129_v20, %v481_v60  ;;  %v493_v6 = vmul.f32 %v1137_v30, %v481_v60 }
  0x88   : > { %v558_v61 = vmul.f32 %v1175_v28, %v544_v54  ;;  %v529_v63 = vadd.f32 %v521_v58, %v500_v57  ;;  %v435_v8 = vmul.f32 %v1131_v24, %v510_v2  ;;  %v465_v10 = vmul.f32 %v1134_v27, %v453_v3 }
  0x89   : > { %v442_v0 = vadd.f32 %v434_v59, %v413_v11  ;;  %v385_v15 = vadd.f32 %v377_v9, %v356_v62  ;;  %v522_v16 = vmul.f32 %v1141_v35, %v510_v2  ;;  %v494_v24 = vmul.f32 %v1137_v30, %v482_v17 }
  0x8a   : > { %566 = vst.msk [vmem:[%s1190_s9 + $0x20] sm:$0xff] %vm231_vm0, %v558_v61  ;;  %v545_v4 = vadd.f32 %v1166_v13, %v529_v63  ;;  %v523_v25 = vmul.f32 %v1141_v35, %v511_v21 }
  0x8b   : > { %v472_v5 = vadd.f32 %v464_v1, %v442_v0  ;;  %v414_v7 = vadd.f32 %v406_v19, %v385_v15 }
  0x8c   : > { %v559_v12 = vmul.f32 %v1175_v28, %v545_v4 }
  0x8d   : > { %v501_v14 = vadd.f32 %v493_v6, %v472_v5  ;;  %v443_v20 = vadd.f32 %v435_v8, %v414_v7 }
  0x8e   : > { %567 = vst.msk [vmem:[%s1190_s9 + $0x28] sm:$0xff] %vm231_vm0, %v559_v12 }
  0x8f   : > { %v530_v18 = vadd.f32 %v522_v16, %v501_v14  ;;  %v473_v22 = vadd.f32 %v465_v10, %v443_v20 }
  0x91   : > { %v546_v27 = vadd.f32 %v1166_v13, %v530_v18  ;;  %v502_v23 = vadd.f32 %v494_v24, %v473_v22 }
  0x93   : > { %v560_v26 = vmul.f32 %v1175_v28, %v546_v27  ;;  %v531_v29 = vadd.f32 %v523_v25, %v502_v23 }
  0x95   : > { %568 = vst.msk [vmem:[%s1190_s9 + $0x30] sm:$0xff] %vm231_vm0, %v560_v26  ;;  %v547_v31 = vadd.f32 %v1166_v13, %v531_v29 }
  0x97   : > { %v561_v30 = vmul.f32 %v1175_v28, %v547_v31 }
  0x99   : > { %569 = vst.msk [vmem:[%s1190_s9 + $0x38] sm:$0xff] %vm231_vm0, %v561_v30 }
  0x9a   : > { %829 = shalt.err (!%p826_p7)
}
  0x9b   : > { %s830_s5 = scalar_lea.hbm %s1258_s26, 1024  ;;  %s834_s23 = scalar_lea.hbm %s1309_s4, 2048 }
  0x9c   : > { %p831_p9 = scmp.ne.s32.totalorder %s1258_s26, %s830_s5  ;;  %p835_p5 = scmp.lt.u32.totalorder %s1258_s26, %s1309_s4 }
  0x9d   : > { %p836_p11 = scmp.lt.u32.totalorder %s834_s23, %s830_s5  ;;  %p838_p4 = scmp.lt.u32.totalorder %s830_s5, %s1258_s26 }
  0x9e   : > { %p832_p1 = pnand %p831_p9, %p1015_p12 }
  0x9f   : > { %p837_p2 = por %p836_p11, %p835_p5 }
  0xa0   : > { %p833_p0 = pneg %p832_p1 }
  0xa1   : > { %p839_p6 = por %p838_p4, %p837_p2 }
  0xa3   : > { %p840_p8 = pnand %p839_p6, %p833_p0 }
  0xa5   : > { %843 = shalt.err (!%p840_p8)
}
  0xa6   : > { %s894_s9 = smov 128   ;;  %s895_s10 = smov 8  }
  0xa7   : > { %702 = dma.vmem_to_hbm [thread:$0]  (%p1015_p12), %s1253_s28, 1024, %s1258_s26, %s571_s8, %s894_s9, %s894_s9, %s895_s10  }
  0xa8 PF: > { %s599_s6 = sand.u32 1, %s874_s15   ;;  %p1324_p10 = scmp.ne.s32.totalorder %s1314_s22, 0 }
  0xa9   : > { %p1325_p13 = scmp.ge.s32.totalorder %s886_s18, 2  ;;  %s600_s7 = scalar_lea.sflag [#allocation5], %s599_s6 }
  0xab   : > { %p713_p3 = pnand %p1325_p13, %p1324_p10 }
  0xad   : > { %869 = dma.done.wait (!%p713_p3), %s600_s7, 1024  }
  0xae   : > { %871 = vsyncadd (!%p713_p3), %s600_s7, 4294966272  ;;  %p18_p7 = scmp.ge.s32.totalorder %s977_s27, 4   ;;  %s1326_s15 = smov %s878_s16 }
  0xaf   : > { %s1327_s16 = smov %s882_s17  ;;  %s1328_s17 = smov %s1011_s24 }
  0xb0   : > { %s1329_s18 = smov %s977_s27  ;;  %20 = sbr.rel (!%p18_p7) target bundleno = 6 (0x6), region = 87 }
  0xb7   :  { %605 = vsyncpa [#allocation4], 1 }
  0xb8   :  { %607 = vsyncpa [#allocation4 + $0x1], 1 }
  0xb9   :  { %608 = vsyncpa [#allocation7], 1 }
  0xba   :  { %609 = vsyncpa [#allocation5], 1 }
  0xbb   :  { %611 = vsyncpa [#allocation5 + $0x1], 1 }

</bundles_post_ra>
